<compile_context>
chip_gen: v5e
topology: v5e:2x2
jax: 0.10.0
libtpu: 0.0.40
codegen_flags: <defaults>
</compile_context>

<pallas_src>
import functools

import jax
import jax.numpy as jnp
from jax.experimental import pallas as pl
from jax.experimental.pallas import tpu as pltpu

HID_SIZE = 128
HEAD_PAD = 128              # lane-dense fused-head width (mu | var | value | 0-pad)
_SUBLANE = 8
_VMEM_TILE_BUDGET = 20 << 20   # budget for double-buffered x/out tiles
_VMEM_LIMIT_BYTES = 28 << 20   # explicit: v5e scoped default is only 16 MiB


def _round_up(n, m):
    return (n + m - 1) // m * m


def a2c_fused_kernel(x_ref, w1_ref, b1_ref, wh_ref, bh_ref, out_ref, *, act_size):
    # base = ReLU(x @ W1 + b1) — MXU, f32 accumulate.  The x cast is in-VMEM
    # (a no-op when weights are f32, a VPU cast when weights were pre-cast to
    # bf16 in fuse_head_params).
    x = x_ref[...].astype(w1_ref.dtype)
    base = jnp.dot(x, w1_ref[...], preferred_element_type=jnp.float32) + b1_ref[...]
    base = jnp.maximum(base, 0.0)

    # Single fused head matmul: z = base @ [Wmu | Wvar | Wv | 0] + [bmu | bvar | bv | 0]
    z = jnp.dot(base.astype(wh_ref.dtype), wh_ref[...],
                preferred_element_type=jnp.float32) + bh_ref[...]

    # Per-lane activation select with a SINGLE exp:
    #   mu lanes    [0, act)      : tanh(z)     = (exp(2z) - 1) / (exp(2z) + 1)
    #   var lanes   [act, 2*act)  : softplus(z) = log1p(exp(z)), z if z > 20
    #   value lane  2*act         : identity
    #   pad lanes                 : raw z (== 0 since weights/bias are zero)
    col = jax.lax.broadcasted_iota(jnp.int32, z.shape, 1)
    is_mu = col < act_size
    is_head = col < 2 * act_size
    arg = jnp.where(is_mu, jnp.minimum(2.0 * z, 40.0), jnp.minimum(z, 20.0))
    e = jnp.exp(arg)
    tanh_z = (e - 1.0) / (e + 1.0)            # exact divide keeps f32 accuracy
    softplus_z = jnp.where(z > 20.0, z, jnp.log1p(e))
    out = jnp.where(is_mu, tanh_z, jnp.where(is_head, softplus_z, z))
    out_ref[...] = out.astype(out_ref.dtype)


def _select_batch_tile(B, block_b, obs, out_itemsize):
    """Largest batch tile that fits the VMEM budget, preferring >=2 grid steps
    (so v7x can shard the 'parallel' batch axis over both TensorCores)."""
    tb = _round_up(min(block_b, B), _SUBLANE)
    # Double-buffered input tile (f32 rows) + output tile must fit the budget.
    per_row = 2 * (obs * 4 + HEAD_PAD * out_itemsize)
    max_tb = max(_SUBLANE, (_VMEM_TILE_BUDGET // per_row) // _SUBLANE * _SUBLANE)
    tb = min(tb, max_tb)
    if B >= 2 * _SUBLANE:  # split into at least two blocks when the batch allows
        half = _round_up(pl.cdiv(B, 2), _SUBLANE)
        tb = min(tb, half)
    return max(tb, _SUBLANE)


def bipedal_walker_a2c_forward(x, fused_params, *, act_size, block_b=4096,
                               out_dtype=jnp.float32, split=True):
    """x: [B, obs] f32.  fused_params: (w1, b1, w_heads, b_heads) from
    fuse_head_params (weights may be pre-cast to bf16 there, biases stay f32).
    Returns (mu [B,act], var [B,act], value [B,1]) in out_dtype, or the packed
    [B, 2*act+1] slab if split=False."""
    w1, b1, wh, bh = fused_params
    B, obs = x.shape
    assert w1.shape == (obs, HID_SIZE) and wh.shape == (HID_SIZE, HEAD_PAD)

    out_itemsize = jnp.dtype(out_dtype).itemsize
    tb = _select_batch_tile(B, block_b, obs, out_itemsize)
    grid = (pl.cdiv(B, tb),)   # ragged boundary block; no wrapper-side pad copy

    kernel = functools.partial(a2c_fused_kernel, act_size=act_size)

    out = pl.pallas_call(
        kernel,
        out_shape=jax.ShapeDtypeStruct((B, HEAD_PAD), out_dtype),
        grid_spec=pltpu.PrefetchScalarGridSpec(
            num_scalar_prefetch=0,
            grid=grid,
            in_specs=[
                pl.BlockSpec((tb, obs), lambda i: (i, 0)),               # x tile
                pl.BlockSpec((obs, HID_SIZE), lambda i: (0, 0)),         # W1 (resident)
                pl.BlockSpec((1, HID_SIZE), lambda i: (0, 0)),           # b1
                pl.BlockSpec((HID_SIZE, HEAD_PAD), lambda i: (0, 0)),    # fused W heads
                pl.BlockSpec((1, HEAD_PAD), lambda i: (0, 0)),           # fused b heads
            ],
            out_specs=pl.BlockSpec((tb, HEAD_PAD), lambda i: (i, 0)),
        ),
        compiler_params=pltpu.CompilerParams(
            dimension_semantics=("parallel",),        # v7x: batch over both TCs
            vmem_limit_bytes=_VMEM_LIMIT_BYTES),      # big tiles also fit v5e
    )(x, w1, b1, wh, bh)

    # One contiguous slice of the packed result (single post-kernel op).
    packed = out[:, :2 * act_size + 1]
    if not split:
        return packed
    mu = packed[:, :act_size]
    var = packed[:, act_size:2 * act_size]
    val = packed[:, 2 * act_size:]
    return mu, var, val


def init_params(key, obs_size, act_size):
    """nn.Linear-style U(-1/sqrt(fan_in), 1/sqrt(fan_in)) init.
    Weights stored as [in, out] (transposed vs. PyTorch)."""
    def linear(key, fan_in, fan_out):
        kw, kb = jax.random.split(key)
        bound = 1.0 / jnp.sqrt(jnp.float32(fan_in))
        w = jax.random.uniform(kw, (fan_in, fan_out), jnp.float32, -bound, bound)
        b = jax.random.uniform(kb, (1, fan_out), jnp.float32, -bound, bound)
        return w, b

    k1, k2, k3, k4 = jax.random.split(key, 4)
    w1, b1 = linear(k1, obs_size, HID_SIZE)
    wmu, bmu = linear(k2, HID_SIZE, act_size)
    wvar, bvar = linear(k3, HID_SIZE, act_size)
    wv, bv = linear(k4, HID_SIZE, 1)
    return (w1, b1, wmu, bmu, wvar, bvar, wv, bv)


def fuse_head_params(params, act_size, compute_dtype=jnp.float32):
    """Concatenate the three head weights/biases into one lane-dense [128,128]
    weight and [1,128] bias: columns [mu | var | value | zero-pad].  Matmul
    operands are (optionally) cast ONCE here; biases stay f32."""
    (w1, b1, wmu, bmu, wvar, bvar, wv, bv) = params
    wh = jnp.zeros((HID_SIZE, HEAD_PAD), jnp.float32)
    wh = wh.at[:, :act_size].set(wmu)
    wh = wh.at[:, act_size:2 * act_size].set(wvar)
    wh = wh.at[:, 2 * act_size:2 * act_size + 1].set(wv)
    bh = jnp.zeros((1, HEAD_PAD), jnp.float32)
    bh = bh.at[:, :act_size].set(bmu)
    bh = bh.at[:, act_size:2 * act_size].set(bvar)
    bh = bh.at[:, 2 * act_size:2 * act_size + 1].set(bv)
    return (w1.astype(compute_dtype), b1, wh.astype(compute_dtype), bh)


def reference_forward(x, params):
    (w1, b1, wmu, bmu, wvar, bvar, wv, bv) = params
    base = jnp.maximum(x @ w1 + b1, 0.0)
    mu = jnp.tanh(base @ wmu + bmu)
    var = jax.nn.softplus(base @ wvar + bvar)
    val = base @ wv + bv
    return mu, var, val


if __name__ == "__main__":
    # BipedalWalker-style sizes: obs_size=(24,), act_size=(4,); small batch.
    B, OBS, ACT = 8, 24, 4

    key = jax.random.PRNGKey(0)
    kx, kp, kx2 = jax.random.split(key, 3)
    x = jax.random.normal(kx, (B, OBS), jnp.float32)
    params = init_params(kp, OBS, ACT)
    fused = fuse_head_params(params, ACT)

    # --- small batch (single block, full-f32 path) ---
    mu, var, val = jax.block_until_ready(
        bipedal_walker_a2c_forward(x, fused, act_size=ACT))
    mu_r, var_r, val_r = reference_forward(x, params)
    assert mu.shape == (B, ACT) and var.shape == (B, ACT) and val.shape == (B, 1)
    assert jnp.allclose(mu, mu_r, atol=3e-5), "mu mismatch"
    assert jnp.allclose(var, var_r, atol=3e-5), "var mismatch"
    assert jnp.allclose(val, val_r, atol=3e-5), "value mismatch"

    # --- larger batch: exercises the ragged cdiv grid (no pad copy), multiple
    # grid steps, and the "parallel" megacore dimension semantics ---
    B2 = 1000  # not a multiple of the 256 tile -> ragged boundary block
    x2 = jax.random.normal(kx2, (B2, OBS), jnp.float32)
    mu2, var2, val2 = jax.block_until_ready(
        bipedal_walker_a2c_forward(x2, fused, act_size=ACT, block_b=256))
    mu2_r, var2_r, val2_r = reference_forward(x2, params)
    assert mu2.shape == (B2, ACT) and var2.shape == (B2, ACT) and val2.shape == (B2, 1)
    assert jnp.allclose(mu2, mu2_r, atol=1e-4), "mu mismatch (grid)"
    assert jnp.allclose(var2, var2_r, atol=1e-4), "var mismatch (grid)"
    assert jnp.allclose(val2, val2_r, atol=1e-4), "value mismatch (grid)"

    # --- default big tile path (block_b=4096 -> 2 grid steps for B=1000) ---
    mu2b, var2b, val2b = jax.block_until_ready(
        bipedal_walker_a2c_forward(x2, fused, act_size=ACT))
    assert jnp.allclose(mu2b, mu2_r, atol=1e-4), "mu mismatch (big tile)"
    assert jnp.allclose(var2b, var2_r, atol=1e-4), "var mismatch (big tile)"
    assert jnp.allclose(val2b, val2_r, atol=1e-4), "value mismatch (big tile)"

    # --- bf16 matmul operands (weights pre-cast ONCE), f32 accumulate/epilogue ---
    fused_bf16 = fuse_head_params(params, ACT, compute_dtype=jnp.bfloat16)
    mu3, var3, val3 = jax.block_until_ready(
        bipedal_walker_a2c_forward(x2, fused_bf16, act_size=ACT))
    assert jnp.allclose(mu3, mu2_r, atol=0.1, rtol=0.1), "mu mismatch (bf16 compute)"
    assert jnp.allclose(var3, var2_r, atol=0.1, rtol=0.1), "var mismatch (bf16 compute)"
    assert jnp.allclose(val3, val2_r, atol=0.1, rtol=0.1), "value mismatch (bf16 compute)"

    # --- bf16 output (halved writeback traffic); epilogue still f32 ---
    mu4, var4, val4 = jax.block_until_ready(
        bipedal_walker_a2c_forward(x2, fused, act_size=ACT,
                                   out_dtype=jnp.bfloat16))
    assert mu4.dtype == jnp.bfloat16
    assert jnp.allclose(mu4.astype(jnp.float32), mu2_r, atol=0.05, rtol=0.05), \
        "mu mismatch (bf16 out)"
    assert jnp.allclose(var4.astype(jnp.float32), var2_r, atol=0.05, rtol=0.05), \
        "var mismatch (bf16 out)"
    assert jnp.allclose(val4.astype(jnp.float32), val2_r, atol=0.05, rtol=0.05), \
        "value mismatch (bf16 out)"

    print("KERNEL_OK")
</pallas_src>

<mosaic_0001>
module attributes {stable_mosaic.version = 11 : i64} {
  func.func @a2c_fused_kernel(%arg0: i32, %arg1: memref<8x24xf32, #tpu.memory_space<vmem>>, %arg2: memref<24x128xf32, #tpu.memory_space<vmem>>, %arg3: memref<1x128xf32, #tpu.memory_space<vmem>>, %arg4: memref<128x128xf32, #tpu.memory_space<vmem>>, %arg5: memref<1x128xf32, #tpu.memory_space<vmem>>, %arg6: memref<8x128xf32, #tpu.memory_space<vmem>>) attributes {dimension_semantics = [#tpu.dimension_semantics<parallel>], iteration_bounds = array<i64: 1>, scalar_prefetch = 0 : i64, scratch_operands = 0 : i64, tpu.core_type = #tpu.core_type<tc>, window_params = [{transform_indices = @transform_0, window_bounds = array<i64: 8, 24>}, {pipeline_mode = #tpu.pipeline_mode<synchronous>, transform_indices = @transform_1, window_bounds = array<i64: 24, 128>}, {pipeline_mode = #tpu.pipeline_mode<synchronous>, transform_indices = @transform_2, window_bounds = array<i64: 1, 128>}, {pipeline_mode = #tpu.pipeline_mode<synchronous>, transform_indices = @transform_3, window_bounds = array<i64: 128, 128>}, {pipeline_mode = #tpu.pipeline_mode<synchronous>, transform_indices = @transform_4, window_bounds = array<i64: 1, 128>}, {transform_indices = @transform_5, window_bounds = array<i64: 8, 128>}]} {
    %c0 = arith.constant 0 : index
    %c0_0 = arith.constant 0 : index
    %0 = vector.load %arg1[%c0, %c0_0] : memref<8x24xf32, #tpu.memory_space<vmem>>, vector<8x24xf32>
    %c0_1 = arith.constant 0 : index
    %c0_2 = arith.constant 0 : index
    %1 = vector.load %arg2[%c0_1, %c0_2] : memref<24x128xf32, #tpu.memory_space<vmem>>, vector<24x128xf32>
    %cst = arith.constant dense<0.000000e+00> : vector<8x128xf32>
    %2 = tpu.matmul %0, %1, %cst {dimension_numbers = #tpu.dot_dimension_numbers<[1], [0], [0], [1], [0, 0, 1, 1], [], []>} : vector<8x24xf32>, vector<24x128xf32>, vector<8x128xf32> -> vector<8x128xf32>
    %c0_3 = arith.constant 0 : index
    %c0_4 = arith.constant 0 : index
    %3 = vector.load %arg3[%c0_3, %c0_4] : memref<1x128xf32, #tpu.memory_space<vmem>>, vector<1x128xf32>
    %4 = vector.broadcast %3 : vector<1x128xf32> to vector<8x128xf32>
    %5 = arith.addf %2, %4 : vector<8x128xf32>
    %cst_5 = arith.constant 0.000000e+00 : f32
    %6 = vector.broadcast %cst_5 : f32 to vector<8x128xf32>
    %7 = arith.maximumf %5, %6 : vector<8x128xf32>
    %c0_6 = arith.constant 0 : index
    %c0_7 = arith.constant 0 : index
    %8 = vector.load %arg4[%c0_6, %c0_7] : memref<128x128xf32, #tpu.memory_space<vmem>>, vector<128x128xf32>
    %cst_8 = arith.constant dense<0.000000e+00> : vector<8x128xf32>
    %9 = tpu.matmul %7, %8, %cst_8 {dimension_numbers = #tpu.dot_dimension_numbers<[1], [0], [0], [1], [0, 0, 1, 1], [], []>} : vector<8x128xf32>, vector<128x128xf32>, vector<8x128xf32> -> vector<8x128xf32>
    %c0_9 = arith.constant 0 : index
    %c0_10 = arith.constant 0 : index
    %10 = vector.load %arg5[%c0_9, %c0_10] : memref<1x128xf32, #tpu.memory_space<vmem>>, vector<1x128xf32>
    %11 = vector.broadcast %10 : vector<1x128xf32> to vector<8x128xf32>
    %12 = arith.addf %9, %11 : vector<8x128xf32>
    %13 = tpu.iota {dimensions = array<i32: 1>} : vector<8x128xi32>
    %c4_i32 = arith.constant 4 : i32
    %14 = vector.broadcast %c4_i32 : i32 to vector<8x128xi32>
    %15 = arith.cmpi slt, %13, %14 : vector<8x128xi32>
    %c8_i32 = arith.constant 8 : i32
    %16 = vector.broadcast %c8_i32 : i32 to vector<8x128xi32>
    %17 = arith.cmpi slt, %13, %16 : vector<8x128xi32>
    %cst_11 = arith.constant 2.000000e+00 : f32
    %18 = vector.broadcast %cst_11 : f32 to vector<8x128xf32>
    %19 = arith.mulf %18, %12 : vector<8x128xf32>
    %cst_12 = arith.constant 4.000000e+01 : f32
    %20 = vector.broadcast %cst_12 : f32 to vector<8x128xf32>
    %21 = arith.minimumf %19, %20 : vector<8x128xf32>
    %cst_13 = arith.constant 2.000000e+01 : f32
    %22 = vector.broadcast %cst_13 : f32 to vector<8x128xf32>
    %23 = arith.minimumf %12, %22 : vector<8x128xf32>
    %24 = arith.select %15, %21, %23 : vector<8x128xi1>, vector<8x128xf32>
    %25 = math.exp %24 : vector<8x128xf32>
    %cst_14 = arith.constant 1.000000e+00 : f32
    %26 = vector.broadcast %cst_14 : f32 to vector<8x128xf32>
    %27 = arith.subf %25, %26 : vector<8x128xf32>
    %cst_15 = arith.constant 1.000000e+00 : f32
    %28 = vector.broadcast %cst_15 : f32 to vector<8x128xf32>
    %29 = arith.addf %25, %28 : vector<8x128xf32>
    %30 = arith.divf %27, %29 : vector<8x128xf32>
    %cst_16 = arith.constant 2.000000e+01 : f32
    %31 = vector.broadcast %cst_16 : f32 to vector<8x128xf32>
    %32 = arith.cmpf ogt, %12, %31 : vector<8x128xf32>
    %33 = math.log1p %25 : vector<8x128xf32>
    %34 = arith.select %32, %12, %33 : vector<8x128xi1>, vector<8x128xf32>
    %35 = arith.select %17, %34, %12 : vector<8x128xi1>, vector<8x128xf32>
    %36 = arith.select %15, %30, %35 : vector<8x128xi1>, vector<8x128xf32>
    %c0_17 = arith.constant 0 : index
    %c0_18 = arith.constant 0 : index
    %37 = vector.load %arg6[%c0_17, %c0_18] : memref<8x128xf32, #tpu.memory_space<vmem>>, vector<8x128xf32>
    tpu.vector_store %arg6[%c0_17, %c0_18], %36 {strides = array<i32>} : memref<8x128xf32, #tpu.memory_space<vmem>>, vector<8x128xf32>,
    return
  }
  func.func @transform_0(%arg0: i32) -> (i32, i32) {
    %c0_i32 = arith.constant 0 : i32
    %c0_i32_0 = arith.constant 0 : i32
    return %arg0, %c0_i32 : i32, i32
  }
  func.func @transform_1(%arg0: i32) -> (i32, i32) {
    %c0_i32 = arith.constant 0 : i32
    %c0_i32_0 = arith.constant 0 : i32
    %c0_i32_1 = arith.constant 0 : i32
    return %c0_i32, %c0_i32_0 : i32, i32
  }
  func.func @transform_2(%arg0: i32) -> (i32, i32) {
    %c0_i32 = arith.constant 0 : i32
    %c0_i32_0 = arith.constant 0 : i32
    %c0_i32_1 = arith.constant 0 : i32
    return %c0_i32, %c0_i32_0 : i32, i32
  }
  func.func @transform_3(%arg0: i32) -> (i32, i32) {
    %c0_i32 = arith.constant 0 : i32
    %c0_i32_0 = arith.constant 0 : i32
    %c0_i32_1 = arith.constant 0 : i32
    return %c0_i32, %c0_i32_0 : i32, i32
  }
  func.func @transform_4(%arg0: i32) -> (i32, i32) {
    %c0_i32 = arith.constant 0 : i32
    %c0_i32_0 = arith.constant 0 : i32
    %c0_i32_1 = arith.constant 0 : i32
    return %c0_i32, %c0_i32_0 : i32, i32
  }
  func.func @transform_5(%arg0: i32) -> (i32, i32) {
    %c0_i32 = arith.constant 0 : i32
    %c0_i32_0 = arith.constant 0 : i32
    return %arg0, %c0_i32 : i32, i32
  }
}

</mosaic_0001>

<bundles_post_ra>
// kernel: tpu_custom_call.1
= control target key start
LH: loop header
LB: loop body
LE: loop exit
PB: predicated region body
PF: predicated region fallthrough
CT: control target
= control target key end

     0   :  { %10 = vsyncpa [#allocation3], 0  ;;  %s372_s0 = inlined_call_operand.hbm [shape: f32[8,24], index: 0, kind: input, shape index: {}]   ;;  %s373_s1 = inlined_call_operand.hbm [shape: f32[24,128], index: 1, kind: input, shape index: {}]   ;;  %s374_s2 = inlined_call_operand.vmem [shape: f32[1,128], index: 2, kind: input, shape index: {}]   ;;  %s375_s3 = inlined_call_operand.hbm [shape: f32[128,128], index: 3, kind: input, shape index: {}]   ;;  %s376_s4 = inlined_call_operand.vmem [shape: f32[1,128], index: 4, kind: input, shape index: {}]   ;;  %s377_s5 = inlined_call_operand.hbm [shape: f32[8,128], index: 5, kind: output, shape index: {}]  }
   0x1   :  { %11 = vsyncpa [#allocation6], 0  ;;  %s28_s20 = sshll.u32 %s373_s1, 4  ;;  %s29_s20 = int_to_ptr.hbm [resolvable:$true] %s28_s20 }
   0x2   :  { %12 = vsyncpa [#allocation4], 0  ;;  %s316_s21 = smov [#allocation5]   ;;  %s18_s25 = sshll.u32 %s372_s0, 4  ;;  %s19_s25 = int_to_ptr.hbm [resolvable:$true] %s18_s25 }
   0x3   :  { %s30_s22 = sshll.u32 %s316_s21, 4  ;;  %s317_s26 = smov 128   ;;  %s31_s22 = int_to_ptr.vmem [resolvable:$true] %s30_s22 }
   0x4   :  { %s318_s27 = smov 8   ;;  %s319_s28 = smov [#allocation2]  }
   0x5   :  { %36 = dma.hbm_to_vmem [thread:$0]  %s29_s20, 384, %s31_s22, [#allocation6], %s317_s26, %s317_s26, %s318_s27  }
   0x6   :  { %s20_s29 = sshll.u32 %s319_s28, 4  ;;  %s43_s7 = sshll.u32 %s375_s3, 4  ;;  %s21_s29 = int_to_ptr.vmem [resolvable:$true] %s20_s29  ;;  %s44_s7 = int_to_ptr.hbm [resolvable:$true] %s43_s7 }
   0x7   :  { %23 = dma.hbm_to_vmem [thread:$0]  %s19_s25, 128, %s21_s29, [#allocation3]  }
   0x8   :  { %s320_s1 = smov [#allocation7]  }
   0x9   :  { %s45_s8 = sshll.u32 %s320_s1, 4  ;;  %s46_s8 = int_to_ptr.vmem [resolvable:$true] %s45_s8 }
   0xa   :  { %51 = dma.hbm_to_vmem [thread:$0]  %s44_s7, 2048, %s46_s8, [#allocation6], %s317_s26, %s317_s26, %s318_s27  }
   0xb   :  { %310 = dma.done.wait [#allocation3], 128  }
   0xc   :  { %311 = vsyncadd [#allocation3], 4294967168 }
   0xd   :  { %312 = dma.done.wait [#allocation6], 2432  }
   0xe   :  { %313 = vsyncadd [#allocation6], 4294964864  ;;  %v69_v0 = vld [vmem:[#allocation5 + $0x10] sm:$0xff]  ;;  %v68_v1 = vld [vmem:[#allocation5 + $0x8] sm:$0xff]  ;;  %vm74_vm0 = vcmask 195584   ;;  %v139_v24 = vlaneseq  ;;  %s187_s13 = sshll.u32 %s377_s5, 4  ;;  %s188_s13 = int_to_ptr.hbm [resolvable:$true] %s187_s13 }
   0xf   :  { %91 = vmatpush.msra.mxu0 %v69_v0  ;;  %v114_v2 = vld [vmem:[#allocation7 + $0x78] sm:$0xff]  ;;  %v113_v3 = vld [vmem:[#allocation7 + $0x70] sm:$0xff]  ;;  %v67_v4 = vld [vmem:[#allocation5] sm:$0xff] }
  0x10   :  { %119 = vmatpush.msra.mxu1 %v114_v2  ;;  %v66_v5 = vld [vmem:[#allocation2] sm:$0xff]  ;;  %v112_v6 = vld [vmem:[#allocation7 + $0x68] sm:$0xff]  ;;  %v110_v8 = vld [vmem:[#allocation7 + $0x58] sm:$0xff]  ;;  %v140_v27 = vand.u32 127, %v139_v24 }
  0x11   :  { %92 = vmatpush.msra.mxu0 %v68_v1  ;;  %v111_v7 = vld [vmem:[#allocation7 + $0x60] sm:$0xff]  ;;  %v109_v9 = vld [vmem:[#allocation7 + $0x50] sm:$0xff]  ;;  %v108_v10 = vld [vmem:[#allocation7 + $0x48] sm:$0xff] }
  0x12   :  { %120 = vmatpush.msra.mxu1 %v113_v3  ;;  %v107_v11 = vld [vmem:[#allocation7 + $0x40] sm:$0xff]  ;;  %v106_v12 = vld [vmem:[#allocation7 + $0x38] sm:$0xff]  ;;  %v105_v13 = vld [vmem:[#allocation7 + $0x30] sm:$0xff]  ;;  %vm141_vm1 = vcmp.lt.s32.totalorder %v140_v27, 4  ;;  %vm142_vm5 = vcmp.lt.s32.totalorder %v140_v27, 8 }
  0x13   :  { %93 = vmatpush.msra.mxu0 %v67_v4  ;;  %v104_v14 = vld [vmem:[#allocation7 + $0x28] sm:$0xff]  ;;  %v103_v15 = vld [vmem:[#allocation7 + $0x20] sm:$0xff]  ;;  %v102_v16 = vld [vmem:[#allocation7 + $0x18] sm:$0xff] }
  0x14   :  { %198 = vmatmul.msk.f32.vlgmr.msra.gmra.mxu0 %vm74_vm0, %v66_v5  ;;  %121 = vmatpush.msra.mxu1 %v112_v6  ;;  %v101_v17 = vld [vmem:[#allocation7 + $0x10] sm:$0xff]  ;;  %v100_v18 = vld [vmem:[#allocation7 + $0x8] sm:$0xff]  ;;  %v99_v19 = vld [vmem:[#allocation7] sm:$0xff] }
  0x15   :  { %v206_v20 = vld [vmem:[%s374_s2] ss:$0 sm:$0xff]  ;;  %s321_s2 = smov [#allocation8]  }
  0x16   :  { %122 = vmatpush.msra.mxu1 %v111_v7  ;;  %v207_v25 = vld [vmem:[%s376_s4] ss:$0 sm:$0xff]  ;;  %s185_s4 = sshll.u32 %s321_s2, 4  ;;  %s186_s4 = int_to_ptr.vmem [resolvable:$true] %s185_s4 }
  0x18   :  { %123 = vmatpush.msra.mxu1 %v110_v8 }
  0x1a   :  { %124 = vmatpush.msra.mxu1 %v109_v9 }
  0x1c   :  { %125 = vmatpush.msra.mxu1 %v108_v10 }
  0x1e   :  { %126 = vmatpush.msra.mxu1 %v107_v11 }
  0x20   :  { %127 = vmatpush.msra.mxu1 %v106_v12 }
  0x22   :  { %128 = vmatpush.msra.mxu1 %v105_v13 }
  0x24   :  { %129 = vmatpush.msra.mxu1 %v104_v14 }
  0x26   :  { %130 = vmatpush.msra.mxu1 %v103_v15 }
  0x28   :  { %131 = vmatpush.msra.mxu1 %v102_v16 }
  0x2a   :  { %132 = vmatpush.msra.mxu1 %v101_v17 }
  0x2c   :  { %133 = vmatpush.msra.mxu1 %v100_v18 }
  0x2e   :  { %134 = vmatpush.msra.mxu1 %v99_v19 }
  0x91   :  { %v95_v21 = vpop.f32.mrf.mxu0 }
  0x92   :  { %v96_v22 = vadd.f32 %v206_v20, %v95_v21 }
  0x94   :  { %v98_v23 = vmax.f32 %v96_v22, 0.0 }
  0x96   :  { %135 = vmatmul.f32.vlgmr.msra.gmra.mxu1 %v98_v23 }
 0x113   :  { %v136_v26 = vpop.f32.mrf.mxu1 }
 0x114   :  { %v137_v28 = vadd.f32 %v207_v25, %v136_v26 }
 0x116   :  { %v143_v29 = vmul.f32 2.0, %v137_v28  ;;  %v145_v30 = vmin.f32 %v137_v28, 20.0  ;;  %vm166_vm7 = vcmp.gt.f32.partialorder %v137_v28, 20.0 }
 0x118   :  { %v144_v31 = vmin.f32 %v143_v29, 40.0 }
 0x11a   :  { %v146_v32 = vsel %vm141_vm1, %v144_v31, %v145_v30 }
 0x11b   :  { %v147_v33 = vmul.f32 1.442695, %v146_v32 }
 0x11d   :  { %208 = vpow2.f32 %v147_v33 }
 0x123   :  { %v209_v34 = vpop.eup %208 }
 0x124   :  { %v150_v35 = vadd.f32 1.0, %v209_v34  ;;  %v170_v36 = vmul.f32 -0.5, %v209_v34  ;;  %v173_v41 = vand.u32 2147483647, %v209_v34  ;;  %v199_v51 = vadd.f32 -1.0, %v209_v34 }
 0x126   :  { %210 = vrcp.f32 %v150_v35  ;;  %v171_v38 = vadd.f32 1.0, %v170_v36  ;;  %v162_v44 = vand.u32 2147483648, %v150_v35  ;;  %v160_v47 = vand.u32 2147483647, %v150_v35 }
 0x127   :  { %212 = vlog2.f32 %v150_v35  ;;  %vm174_vm3 = vcmp.lt.f32.partialorder %v173_v41, 0.0004427343  ;;  %vm156_vm4 = vweird.f32 %v150_v35 }
 0x128   :  { %v172_v45 = vmul.f32 %v209_v34, %v171_v38  ;;  %v163_v50 = vor.u32 1.1754944e-38, %v162_v44  ;;  %vm161_vm8 = vcmp.eq.f32.partialorder %v160_v47, 8.507059e+37 }
 0x12c   :  { %v211_v37 = vpop.eup %210 }
 0x12d   :  { %v213_v39 = vpop.eup %212  ;;  %v152_v40 = vmul.f32 %v211_v37, %v150_v35  ;;  %vm157_vm2 = vweird.f32 %v211_v37 }
 0x12e   :  { %v169_v42 = vmul.f32 0.6931472, %v213_v39  ;;  %vm158_vm6 = vmor %vm156_vm4, %vm157_vm2 }
 0x12f   :  { %v153_v43 = vsub.f32 1.0, %v152_v40 }
 0x130   :  { %v175_v48 = vsel %vm174_vm3, %v172_v45, %v169_v42 }
 0x131   :  { %v154_v46 = vmul.f32 %v211_v37, %v153_v43  ;;  %v176_v53 = vsel %vm166_vm7, %v137_v28, %v175_v48 }
 0x132   :  { %v177_v56 = vsel %vm142_vm5, %v176_v53, %v137_v28 }
 0x133   :  { %v155_v49 = vadd.f32 %v211_v37, %v154_v46 }
 0x135   :  { %v159_v52 = vsel %vm158_vm6, %v211_v37, %v155_v49 }
 0x136   :  { %v164_v54 = vsel %vm161_vm8, %v163_v50, %v159_v52 }
 0x137   :  { %v165_v55 = vmul.f32 %v199_v51, %v164_v54 }
 0x139   :  { %v178_v57 = vsel %vm141_vm1, %v165_v55, %v177_v56 }
 0x13a   :  { %179 = vst [vmem:[#allocation8] sm:$0xff] %v178_v57 }
 0x13b   :  { %190 = dma.vmem_to_hbm [thread:$0]  %s186_s4, 128, %s188_s13, [#allocation4]  }
 0x13c   :  { %314 = dma.done.wait [#allocation4], 128  }
 0x13d   :  { %315 = vsyncadd [#allocation4], 4294967168 }
 0x13e   :  { %195 = vsyncpa [#allocation3], 1 }
 0x13f   :  { %196 = vsyncpa [#allocation6], 1 }
 0x140   :  { %197 = vsyncpa [#allocation4], 1 }

</bundles_post_ra>
